<compile_context>
chip_gen: v7x
topology: tpu7x:2x2x1
jax: 0.10.0
libtpu: 0.0.40
codegen_flags: <defaults>
</compile_context>

<pallas_src>
import collections
import functools

import jax
import jax.numpy as jnp
from jax.experimental import pallas as pl
from jax.experimental.pallas import tpu as pltpu


def _round_up(x, m):
    return ((x + m - 1) // m) * m


# ----------------------------------------------------------------------------
# Chip / feature detection (cached, one-time).
# ----------------------------------------------------------------------------
@functools.lru_cache(None)
def _device_kind():
    try:
        return jax.devices()[0].device_kind.lower()
    except Exception:
        return ""


@functools.lru_cache(None)
def _is_v7x():
    k = _device_kind()
    return ("v7" in k) or ("7x" in k)


@functools.lru_cache(None)
def _vmem_budget_bytes():
    """Per-chip VMEM capacity minus ~15% headroom for Mosaic scratch."""
    cap = 0
    try:
        cap = int(pltpu.get_tpu_info().vmem_capacity_bytes)
    except Exception:
        cap = 0
    if cap <= 0:
        cap = (64 << 20) if _is_v7x() else (128 << 20)
    return int(cap * 0.85)


@functools.lru_cache(None)
def _single_buffer_supported():
    """One-time AOT probe: does this build accept pl.Buffered(1) operands?"""
    try:
        def k(a_ref, o_ref):
            o_ref[...] = a_ref[...] * 2.0
        f = pl.pallas_call(
            k,
            out_shape=jax.ShapeDtypeStruct((16, 128), jnp.float32),
            grid_spec=pltpu.PrefetchScalarGridSpec(
                num_scalar_prefetch=0, grid=(2,),
                in_specs=[pl.BlockSpec((8, 128), lambda i: (0, 0),
                                       pipeline_mode=pl.Buffered(1))],
                out_specs=pl.BlockSpec((8, 128), lambda i: (i, 0))),
        )
        jax.jit(f).lower(jax.ShapeDtypeStruct((8, 128), jnp.float32)).compile()
        return True
    except Exception:
        return False


@functools.lru_cache(None)
def _core_parallel_supported():
    """One-time AOT probe: CORE_PARALLEL batch axis (v7x megacore only)."""
    if not _is_v7x() or not hasattr(pltpu, "CORE_PARALLEL"):
        return False
    try:
        def k(a_ref, o_ref):
            o_ref[...] = a_ref[...] + 1.0
        f = pl.pallas_call(
            k,
            out_shape=jax.ShapeDtypeStruct((16, 128), jnp.float32),
            grid_spec=pltpu.PrefetchScalarGridSpec(
                num_scalar_prefetch=0, grid=(2,),
                in_specs=[pl.BlockSpec((8, 128), lambda i: (i, 0))],
                out_specs=pl.BlockSpec((8, 128), lambda i: (i, 0))),
            compiler_params=pltpu.CompilerParams(
                dimension_semantics=(pltpu.CORE_PARALLEL,)),
        )
        jax.jit(f).lower(jax.ShapeDtypeStruct((16, 128), jnp.float32)).compile()
        return True
    except Exception:
        return False


# ----------------------------------------------------------------------------
# Parameter prep (once, outside the hot path).
# ----------------------------------------------------------------------------
TwoLayerNetParams = collections.namedtuple(
    "TwoLayerNetParams",
    ["w1_t", "b1_r", "w2_t", "b2_r", "hidden", "num_classes", "feat_dtype"])


def prepare_params(w1, b1, w2, b2, *, compute_dtype=jnp.float32,
                   feat_dtype=None):
    """One-time weight prep.

    w1: [hidden, input_dim]   b1: [hidden]        (PyTorch nn.Linear layout)
    w2: [num_classes, hidden] b2: [num_classes]

    Transposes to [in, out] and zero-pads hidden / num_classes up to
    multiples of 128 lanes (only if needed), so MXU ops and output stores are
    lane-dense.  Padding is exact (zero W1 cols + zero b1 -> zero padded
    hidden activations; zero W2 rows/cols -> real lanes bit-identical).

    compute_dtype=jnp.bfloat16 is recommended on v5e/v6e/v7x (MXU bf16;
    accumulation and the bias/ReLU epilogue stay in f32).
    feat_dtype controls the l1scores writeback dtype (defaults to
    compute_dtype); note that in bf16 mode scores is computed from the bf16
    hidden activations, i.e. it is an exact function of the *returned*
    l1scores only if feat_dtype == compute_dtype.
    """
    hidden, input_dim = w1.shape
    num_classes = w2.shape[0]
    hid_p = _round_up(hidden, 128)
    cls_p = _round_up(num_classes, 128)
    if feat_dtype is None:
        feat_dtype = compute_dtype

    w1_t = jnp.zeros((input_dim, hid_p), compute_dtype)
    w1_t = w1_t.at[:, :hidden].set(w1.T.astype(compute_dtype))
    b1_r = jnp.zeros((1, hid_p), compute_dtype)
    b1_r = b1_r.at[:, :hidden].set(b1.astype(compute_dtype))
    w2_t = jnp.zeros((hid_p, cls_p), compute_dtype)
    w2_t = w2_t.at[:hidden, :num_classes].set(w2.T.astype(compute_dtype))
    b2_r = jnp.zeros((1, cls_p), compute_dtype)
    b2_r = b2_r.at[:, :num_classes].set(b2.astype(compute_dtype))
    return TwoLayerNetParams(w1_t, b1_r, w2_t, b2_r, int(hidden),
                             int(num_classes), jnp.dtype(feat_dtype))


# ----------------------------------------------------------------------------
# Kernels.
# ----------------------------------------------------------------------------
def _make_resident_kernel(emit_feat):
    """Weights fully resident in VMEM; grid = (batch_tiles,)."""
    def kernel(x_ref, w1_ref, b1_ref, w2_ref, b2_ref, *out_refs):
        scores_ref = out_refs[0]
        # In-kernel cast (VPU, hidden under MXU slack) instead of a wrapper
        # XLA cast pass over x in HBM.
        x = x_ref[...].astype(w1_ref.dtype)
        h = jnp.dot(x, w1_ref[...], preferred_element_type=jnp.float32)
        h = jnp.maximum(h + b1_ref[...].astype(jnp.float32), 0.0)
        if emit_feat:
            out_refs[1][...] = h.astype(out_refs[1].dtype)
        s = jnp.dot(h.astype(w2_ref.dtype), w2_ref[...],
                    preferred_element_type=jnp.float32)
        scores_ref[...] = (s + b2_ref[...].astype(jnp.float32)
                           ).astype(scores_ref.dtype)
    return kernel


def _make_tiled_kernel(emit_feat):
    """Hidden-dim streaming; grid = (batch_tiles, hidden_tiles)."""
    def kernel(x_ref, w1_ref, b1_ref, w2_ref, b2_ref, *refs):
        if emit_feat:
            scores_ref, feat_ref, acc_ref = refs
        else:
            scores_ref, acc_ref = refs
            feat_ref = None
        h_idx = pl.program_id(1)

        @pl.when(h_idx == 0)
        def _():
            acc_ref[...] = jnp.zeros_like(acc_ref)

        x = x_ref[...].astype(w1_ref.dtype)
        h = jnp.dot(x, w1_ref[...], preferred_element_type=jnp.float32)
        h = jnp.maximum(h + b1_ref[...].astype(jnp.float32), 0.0)
        if emit_feat:
            feat_ref[...] = h.astype(feat_ref.dtype)
        acc_ref[...] += jnp.dot(h.astype(w2_ref.dtype), w2_ref[...],
                                preferred_element_type=jnp.float32)

        @pl.when(h_idx == pl.num_programs(1) - 1)
        def _():
            scores_ref[...] = (acc_ref[...] + b2_ref[...].astype(jnp.float32)
                               ).astype(scores_ref.dtype)
    return kernel


# ----------------------------------------------------------------------------
# Forward.
# ----------------------------------------------------------------------------
@functools.partial(
    jax.jit,
    static_argnames=("last", "block_b", "hidden", "num_classes",
                     "feat_dtype_name", "return_padded", "force_hidden_tile",
                     "single_buffer", "core_parallel"))
def _forward_impl(x, w1_t, b1_r, w2_t, b2_r, *, last, block_b, hidden,
                  num_classes, feat_dtype_name, return_padded,
                  force_hidden_tile, single_buffer, core_parallel):
    B, in_dim = x.shape
    hid_p = w1_t.shape[1]
    cls_p = w2_t.shape[1]
    cdtype = w1_t.dtype
    feat_dtype = jnp.dtype(feat_dtype_name)
    scores_dtype = jnp.float32

    cbytes = jnp.dtype(cdtype).itemsize
    xbytes = jnp.dtype(x.dtype).itemsize
    fbytes = jnp.dtype(feat_dtype).itemsize
    sbytes = jnp.dtype(scores_dtype).itemsize
    budget = _vmem_budget_bytes()
    is_v7x = _is_v7x()

    # ---- batch tile: multiple of 128 when batch allows (MXU-friendly on
    # v5e), otherwise multiple of 8 sublanes; never split the grid on
    # single-TC chips (v5e/v6e). ----
    blk = min(int(block_b), _round_up(B, 8))
    if B >= 128:
        blk = max(128, (blk // 128) * 128)
    blk = _round_up(blk, 8)
    grid_b = pl.cdiv(B, blk)
    if is_v7x and grid_b == 1 and B >= 256:
        # v7x megacore: give both TensorCores work when the batch is large.
        blk = _round_up(pl.cdiv(B, 2), 128)
        grid_b = pl.cdiv(B, blk)
    assert blk % 8 == 0

    use_cp = bool(core_parallel) and grid_b >= 2 and (grid_b % 2 == 0)
    batch_sem = pltpu.CORE_PARALLEL if use_cp else "parallel"
    red_sem = pltpu.ARBITRARY if use_cp else "arbitrary"

    # ---- resident-weight VMEM estimate ----
    wbuf = 1 if single_buffer else 2
    est_res = wbuf * cbytes * (in_dim * hid_p + hid_p + hid_p * cls_p + cls_p)
    est_res += 2 * blk * in_dim * xbytes            # x tile (double-buffered)
    est_res += 2 * blk * cls_p * sbytes             # scores tile
    if last:
        est_res += 2 * blk * hid_p * fbytes         # feat tile

    use_tiled = (force_hidden_tile is not None) or (est_res > budget)

    const2 = lambda i: (0, 0)
    if not use_tiled:
        # -------- resident-weight path --------
        wkw = dict(pipeline_mode=pl.Buffered(1)) if single_buffer else {}
        in_specs = [
            pl.BlockSpec((blk, in_dim), lambda i: (i, 0)),
            pl.BlockSpec((in_dim, hid_p), const2, **wkw),
            pl.BlockSpec((1, hid_p), const2, **wkw),
            pl.BlockSpec((hid_p, cls_p), const2, **wkw),
            pl.BlockSpec((1, cls_p), const2, **wkw),
        ]
        if last:
            out_shape = (jax.ShapeDtypeStruct((B, cls_p), scores_dtype),
                         jax.ShapeDtypeStruct((B, hid_p), feat_dtype))
            out_specs = (pl.BlockSpec((blk, cls_p), lambda i: (i, 0)),
                         pl.BlockSpec((blk, hid_p), lambda i: (i, 0)))
        else:
            out_shape = jax.ShapeDtypeStruct((B, cls_p), scores_dtype)
            out_specs = pl.BlockSpec((blk, cls_p), lambda i: (i, 0))

        vmem_limit = int(min(max(est_res * 1.25 + (2 << 20), 16 << 20), budget))
        res = pl.pallas_call(
            _make_resident_kernel(last),
            out_shape=out_shape,
            grid_spec=pltpu.PrefetchScalarGridSpec(
                num_scalar_prefetch=0,
                grid=(grid_b,),
                in_specs=in_specs,
                out_specs=out_specs),
            compiler_params=pltpu.CompilerParams(
                dimension_semantics=(batch_sem,),
                vmem_limit_bytes=vmem_limit),
        )(x, w1_t, b1_r, w2_t, b2_r)
    else:
        # -------- hidden-dim streaming path (large weights / v7x 64 MiB) ----
        def tiled_est(ht):
            e = 2 * cbytes * (in_dim * ht + ht + ht * cls_p)   # W1/b1/W2 tiles
            e += 2 * cbytes * cls_p                            # b2
            e += 2 * blk * in_dim * xbytes                     # x tile
            e += 2 * blk * cls_p * sbytes                      # scores tile
            e += blk * cls_p * 4                               # f32 acc scratch
            if last:
                e += 2 * blk * ht * fbytes                     # feat tile
            return e

        if force_hidden_tile is not None:
            hid_tile = int(force_hidden_tile)
            assert hid_tile % 128 == 0 and hid_p % hid_tile == 0
        else:
            hid_tile = 128
            for cand in (1024, 512, 256, 128):
                if cand <= hid_p and hid_p % cand == 0 and tiled_est(cand) <= budget:
                    hid_tile = cand
                    break
        grid_h = hid_p // hid_tile

        in_specs = [
            pl.BlockSpec((blk, in_dim), lambda i, h: (i, 0)),
            pl.BlockSpec((in_dim, hid_tile), lambda i, h: (0, h)),
            pl.BlockSpec((1, hid_tile), lambda i, h: (0, h)),
            pl.BlockSpec((hid_tile, cls_p), lambda i, h: (h, 0)),
            pl.BlockSpec((1, cls_p), lambda i, h: (0, 0)),
        ]
        if last:
            out_shape = (jax.ShapeDtypeStruct((B, cls_p), scores_dtype),
                         jax.ShapeDtypeStruct((B, hid_p), feat_dtype))
            out_specs = (pl.BlockSpec((blk, cls_p), lambda i, h: (i, 0)),
                         pl.BlockSpec((blk, hid_tile), lambda i, h: (i, h)))
        else:
            out_shape = jax.ShapeDtypeStruct((B, cls_p), scores_dtype)
            out_specs = pl.BlockSpec((blk, cls_p), lambda i, h: (i, 0))

        vmem_limit = int(min(max(tiled_est(hid_tile) * 1.25 + (2 << 20),
                                 16 << 20), budget))
        res = pl.pallas_call(
            _make_tiled_kernel(last),
            out_shape=out_shape,
            grid_spec=pltpu.PrefetchScalarGridSpec(
                num_scalar_prefetch=0,
                grid=(grid_b, grid_h),
                in_specs=in_specs,
                out_specs=out_specs,
                scratch_shapes=[pltpu.VMEM((blk, cls_p), jnp.float32)]),
            compiler_params=pltpu.CompilerParams(
                dimension_semantics=(batch_sem, red_sem),
                vmem_limit_bytes=vmem_limit),
        )(x, w1_t, b1_r, w2_t, b2_r)

    # ---- only slice when lane padding was actually applied ----
    if last:
        scores_p, feat_p = res
    else:
        scores_p, feat_p = res, None
    if not return_padded:
        if cls_p != num_classes:
            scores_p = scores_p[:, :num_classes]
        if last and hid_p != hidden:
            feat_p = feat_p[:, :hidden]
    return (scores_p, feat_p) if last else scores_p


def two_layer_net_forward(x, params, *, last=False, block_b=512,
                          return_padded=False, _force_hidden_tile=None):
    """Forward pass of TwoLayerNet.

    x: [B, input_dim] (kept in its own dtype; cast to the compute dtype
    happens inside the kernel).  params: output of prepare_params().
    Returns scores [B, num_classes]; if last=True also returns l1scores
    [B, hidden] (post-ReLU hidden activations), matching the PyTorch module.
    With return_padded=True the lane-padded arrays are returned as-is
    (consumer masks), skipping the post-kernel slice HBM round-trip.
    """
    single_buffer = _single_buffer_supported()
    core_parallel = _core_parallel_supported()
    return _forward_impl(
        x, params.w1_t, params.b1_r, params.w2_t, params.b2_r,
        last=bool(last), block_b=int(block_b),
        hidden=params.hidden, num_classes=params.num_classes,
        feat_dtype_name=jnp.dtype(params.feat_dtype).name,
        return_padded=bool(return_padded),
        force_hidden_tile=(None if _force_hidden_tile is None
                           else int(_force_hidden_tile)),
        single_buffer=single_buffer, core_parallel=core_parallel)


def init_params(key, input_dim, num_classes, hidden_units):
    """Deterministic init mimicking nn.Linear's U(-1/sqrt(fan_in), ...)."""
    k1, k2, k3, k4 = jax.random.split(key, 4)
    bound1 = 1.0 / jnp.sqrt(input_dim)
    bound2 = 1.0 / jnp.sqrt(hidden_units)
    w1 = jax.random.uniform(k1, (hidden_units, input_dim), jnp.float32,
                            -bound1, bound1)
    b1 = jax.random.uniform(k2, (hidden_units,), jnp.float32, -bound1, bound1)
    w2 = jax.random.uniform(k3, (num_classes, hidden_units), jnp.float32,
                            -bound2, bound2)
    b2 = jax.random.uniform(k4, (num_classes,), jnp.float32, -bound2, bound2)
    return w1, b1, w2, b2


if __name__ == "__main__":
    # Small shapes consistent with the module.
    B, input_dim, hidden_units, num_classes = 8, 32, 64, 16

    key = jax.random.PRNGKey(0)
    kx, kp = jax.random.split(key)
    x = jax.random.normal(kx, (B, input_dim), jnp.float32)
    w1, b1, w2, b2 = init_params(kp, input_dim, num_classes, hidden_units)

    # Pure-JAX reference.
    h_ref = jnp.maximum(x @ w1.T + b1, 0.0)
    s_ref = h_ref @ w2.T + b2

    # f32 path, last=True (returns (scores, l1scores) like the PyTorch module).
    params_f32 = prepare_params(w1, b1, w2, b2, compute_dtype=jnp.float32)
    scores, l1scores = two_layer_net_forward(x, params_f32, last=True)
    jax.block_until_ready((scores, l1scores))
    assert scores.shape == (B, num_classes) and l1scores.shape == (B, hidden_units)
    assert jnp.allclose(scores, s_ref, atol=1e-5), "scores mismatch (f32)"
    assert jnp.allclose(l1scores, h_ref, atol=1e-5), "l1scores mismatch (f32)"

    # f32 path, last=False: no feat writeback at all.
    scores_only = two_layer_net_forward(x, params_f32, last=False)
    jax.block_until_ready(scores_only)
    assert jnp.allclose(scores_only, s_ref, atol=1e-5), "scores mismatch (last=False)"

    # bf16 mixed-precision path (MXU bf16, f32 accumulation; feat emitted bf16).
    params_bf16 = prepare_params(w1, b1, w2, b2, compute_dtype=jnp.bfloat16)
    s_bf16, l1_bf16 = two_layer_net_forward(x, params_bf16, last=True)
    jax.block_until_ready((s_bf16, l1_bf16))
    assert l1_bf16.dtype == jnp.bfloat16
    assert jnp.allclose(s_bf16, s_ref, atol=5e-2, rtol=5e-2), "scores mismatch (bf16)"
    assert jnp.allclose(l1_bf16.astype(jnp.float32), h_ref, atol=5e-2, rtol=5e-2), \
        "l1scores mismatch (bf16)"

    # Hidden-dim streaming path (the large-weight / v7x 64 MiB case),
    # exercised here by forcing a 128-wide hidden tile on a hidden=256 model.
    hidden2 = 256
    w1b, b1b, w2b, b2b = init_params(jax.random.PRNGKey(1), input_dim,
                                     num_classes, hidden2)
    h2_ref = jnp.maximum(x @ w1b.T + b1b, 0.0)
    s2_ref = h2_ref @ w2b.T + b2b
    params2 = prepare_params(w1b, b1b, w2b, b2b, compute_dtype=jnp.float32)
    s2, l1_2 = two_layer_net_forward(x, params2, last=True,
                                     _force_hidden_tile=128)
    jax.block_until_ready((s2, l1_2))
    assert jnp.allclose(s2, s2_ref, atol=1e-4), "scores mismatch (tiled)"
    assert jnp.allclose(l1_2, h2_ref, atol=1e-4), "l1scores mismatch (tiled)"

    print("KERNEL_OK")
</pallas_src>

<mosaic_0001>
module attributes {stable_mosaic.version = 11 : i64} {
  func.func @kernel(%arg0: i32, %arg1: memref<8x32xf32, #tpu.memory_space<vmem>>, %arg2: memref<32x128xf32, #tpu.memory_space<vmem>>, %arg3: memref<1x128xf32, #tpu.memory_space<vmem>>, %arg4: memref<128x128xf32, #tpu.memory_space<vmem>>, %arg5: memref<1x128xf32, #tpu.memory_space<vmem>>, %arg6: memref<8x128xf32, #tpu.memory_space<vmem>>, %arg7: memref<8x128xf32, #tpu.memory_space<vmem>>) attributes {dimension_semantics = [#tpu.dimension_semantics<parallel>], iteration_bounds = array<i64: 1>, scalar_prefetch = 0 : i64, scratch_operands = 0 : i64, tpu.core_type = #tpu.core_type<tc>, window_params = [{transform_indices = @transform_0, window_bounds = array<i64: 8, 32>}, {pipeline_mode = #tpu.pipeline_mode<synchronous>, transform_indices = @transform_1, window_bounds = array<i64: 32, 128>}, {pipeline_mode = #tpu.pipeline_mode<synchronous>, transform_indices = @transform_2, window_bounds = array<i64: 1, 128>}, {pipeline_mode = #tpu.pipeline_mode<synchronous>, transform_indices = @transform_3, window_bounds = array<i64: 128, 128>}, {pipeline_mode = #tpu.pipeline_mode<synchronous>, transform_indices = @transform_4, window_bounds = array<i64: 1, 128>}, {transform_indices = @transform_5, window_bounds = array<i64: 8, 128>}, {transform_indices = @transform_6, window_bounds = array<i64: 8, 128>}]} {
    %c0 = arith.constant 0 : index
    %c0_0 = arith.constant 0 : index
    %0 = vector.load %arg1[%c0, %c0_0] : memref<8x32xf32, #tpu.memory_space<vmem>>, vector<8x32xf32>
    %c0_1 = arith.constant 0 : index
    %c0_2 = arith.constant 0 : index
    %1 = vector.load %arg2[%c0_1, %c0_2] : memref<32x128xf32, #tpu.memory_space<vmem>>, vector<32x128xf32>
    %cst = arith.constant dense<0.000000e+00> : vector<8x128xf32>
    %2 = tpu.matmul %0, %1, %cst {dimension_numbers = #tpu.dot_dimension_numbers<[1], [0], [0], [1], [0, 0, 1, 1], [], []>} : vector<8x32xf32>, vector<32x128xf32>, vector<8x128xf32> -> vector<8x128xf32>
    %c0_3 = arith.constant 0 : index
    %c0_4 = arith.constant 0 : index
    %3 = vector.load %arg3[%c0_3, %c0_4] : memref<1x128xf32, #tpu.memory_space<vmem>>, vector<1x128xf32>
    %4 = vector.broadcast %3 : vector<1x128xf32> to vector<8x128xf32>
    %5 = arith.addf %2, %4 : vector<8x128xf32>
    %cst_5 = arith.constant 0.000000e+00 : f32
    %6 = vector.broadcast %cst_5 : f32 to vector<8x128xf32>
    %7 = arith.maximumf %5, %6 : vector<8x128xf32>
    %c0_6 = arith.constant 0 : index
    %c0_7 = arith.constant 0 : index
    %8 = vector.load %arg7[%c0_6, %c0_7] : memref<8x128xf32, #tpu.memory_space<vmem>>, vector<8x128xf32>
    tpu.vector_store %arg7[%c0_6, %c0_7], %7 {strides = array<i32>} : memref<8x128xf32, #tpu.memory_space<vmem>>, vector<8x128xf32>,
    %c0_8 = arith.constant 0 : index
    %c0_9 = arith.constant 0 : index
    %9 = vector.load %arg4[%c0_8, %c0_9] : memref<128x128xf32, #tpu.memory_space<vmem>>, vector<128x128xf32>
    %cst_10 = arith.constant dense<0.000000e+00> : vector<8x128xf32>
    %10 = tpu.matmul %7, %9, %cst_10 {dimension_numbers = #tpu.dot_dimension_numbers<[1], [0], [0], [1], [0, 0, 1, 1], [], []>} : vector<8x128xf32>, vector<128x128xf32>, vector<8x128xf32> -> vector<8x128xf32>
    %c0_11 = arith.constant 0 : index
    %c0_12 = arith.constant 0 : index
    %11 = vector.load %arg5[%c0_11, %c0_12] : memref<1x128xf32, #tpu.memory_space<vmem>>, vector<1x128xf32>
    %12 = vector.broadcast %11 : vector<1x128xf32> to vector<8x128xf32>
    %13 = arith.addf %10, %12 : vector<8x128xf32>
    %c0_13 = arith.constant 0 : index
    %c0_14 = arith.constant 0 : index
    %14 = vector.load %arg6[%c0_13, %c0_14] : memref<8x128xf32, #tpu.memory_space<vmem>>, vector<8x128xf32>
    tpu.vector_store %arg6[%c0_13, %c0_14], %13 {strides = array<i32>} : memref<8x128xf32, #tpu.memory_space<vmem>>, vector<8x128xf32>,
    return
  }
  func.func @transform_0(%arg0: i32) -> (i32, i32) {
    %c0_i32 = arith.constant 0 : i32
    %c0_i32_0 = arith.constant 0 : i32
    return %arg0, %c0_i32 : i32, i32
  }
  func.func @transform_1(%arg0: i32) -> (i32, i32) {
    %c0_i32 = arith.constant 0 : i32
    %c0_i32_0 = arith.constant 0 : i32
    %c0_i32_1 = arith.constant 0 : i32
    return %c0_i32, %c0_i32_0 : i32, i32
  }
  func.func @transform_2(%arg0: i32) -> (i32, i32) {
    %c0_i32 = arith.constant 0 : i32
    %c0_i32_0 = arith.constant 0 : i32
    %c0_i32_1 = arith.constant 0 : i32
    return %c0_i32, %c0_i32_0 : i32, i32
  }
  func.func @transform_3(%arg0: i32) -> (i32, i32) {
    %c0_i32 = arith.constant 0 : i32
    %c0_i32_0 = arith.constant 0 : i32
    %c0_i32_1 = arith.constant 0 : i32
    return %c0_i32, %c0_i32_0 : i32, i32
  }
  func.func @transform_4(%arg0: i32) -> (i32, i32) {
    %c0_i32 = arith.constant 0 : i32
    %c0_i32_0 = arith.constant 0 : i32
    %c0_i32_1 = arith.constant 0 : i32
    return %c0_i32, %c0_i32_0 : i32, i32
  }
  func.func @transform_5(%arg0: i32) -> (i32, i32) {
    %c0_i32 = arith.constant 0 : i32
    %c0_i32_0 = arith.constant 0 : i32
    return %arg0, %c0_i32 : i32, i32
  }
  func.func @transform_6(%arg0: i32) -> (i32, i32) {
    %c0_i32 = arith.constant 0 : i32
    %c0_i32_0 = arith.constant 0 : i32
    return %arg0, %c0_i32 : i32, i32
  }
}

</mosaic_0001>

<bundles_post_ra>
// kernel: _forward_impl.1
= control target key start
LH: loop header
LB: loop body
LE: loop exit
PB: predicated region body
PF: predicated region fallthrough
CT: control target
= control target key end

     0   :  { %12 = vsyncpa [#allocation3], 0  ;;  %s621_s0 = inlined_call_operand.hbm [shape: f32[8,32], index: 0, kind: input, shape index: {}]   ;;  %s622_s1 = inlined_call_operand.hbm [shape: f32[32,128], index: 1, kind: input, shape index: {}]   ;;  %s623_s2 = inlined_call_operand.vmem [shape: f32[1,128], index: 2, kind: input, shape index: {}]   ;;  %s624_s3 = inlined_call_operand.hbm [shape: f32[128,128], index: 3, kind: input, shape index: {}]   ;;  %s625_s4 = inlined_call_operand.vmem [shape: f32[1,128], index: 4, kind: input, shape index: {}]   ;;  %s626_s5 = inlined_call_operand.hbm [shape: f32[8,128], index: 5, kind: output, shape index: {0}]   ;;  %s627_s6 = inlined_call_operand.hbm [shape: f32[8,128], index: 6, kind: output, shape index: {1}]  }
   0x1   :  { %13 = vsyncpa [#allocation6], 0 }
   0x2   :  { %14 = vsyncpa [#allocation4], 0 }
   0x3   :  { %15 = vsyncpa [#allocation10], 0  ;;  %s504_s21 = smov [#allocation5]   ;;  %s386_s25 = scalar_lea.hbm %s622_s1, 512 }
   0x4   :  { %s31_s22 = sshll.u32 %s504_s21, 4  ;;  %p387_p0 = scmp.ne.s32.totalorder %s622_s1, %s386_s25  ;;  %s32_s22 = int_to_ptr.vmem [resolvable:$true] %s31_s22 }
   0x5   :  { %p390_p1 = scmp.lt.u32.totalorder %s386_s25, %s622_s1 }
   0x7   :  { %p392_p2 = pnand %p390_p1, %p387_p0 }
   0x9   :  { %395 = shalt.err (!%p392_p2)
}
   0xa   :  { %s396_s30 = scalar_lea.vmem %s32_s22, 512  ;;  %p401_p4 = scmp.lt.s32.totalorder %s32_s22, %s32_s22 }
   0xb   :  { %p397_p3 = scmp.ne.s32.totalorder %s32_s22, %s396_s30  ;;  %p402_p5 = scmp.lt.s32.totalorder %s396_s30, %s396_s30 }
   0xd   :  { %p403_p6 = por %p402_p5, %p401_p4 }
   0xf   :  { %p404_p7 = pnand %p403_p6, %p397_p3 }
  0x11   :  { %407 = shalt.err (!%p404_p7)
}
  0x12   :  { %s505_s7 = smov 128   ;;  %s506_s8 = smov 8  }
  0x13   :  { %37 = dma.hbm_to_vmem [thread:$0]  %s622_s1, 512, %s32_s22, [#allocation6], %s505_s7, %s505_s7, %s506_s8  }
  0x14   :  { %s507_s11 = smov [#allocation2]   ;;  %s508_s13 = smov [#allocation7]  }
  0x15   :  { %s22_s12 = sshll.u32 %s507_s11, 4  ;;  %s45_s14 = sshll.u32 %s508_s13, 4  ;;  %s23_s12 = int_to_ptr.vmem [resolvable:$true] %s22_s12  ;;  %s46_s14 = int_to_ptr.vmem [resolvable:$true] %s45_s14 }
  0x16   :  { %s408_s17 = scalar_lea.hbm %s621_s0, 128 }
  0x17   :  { %p409_p8 = scmp.ne.s32.totalorder %s621_s0, %s408_s17  ;;  %p412_p9 = scmp.lt.u32.totalorder %s408_s17, %s621_s0 }
  0x19   :  { %p414_p10 = pnand %p412_p9, %p409_p8 }
  0x1b   :  { %417 = shalt.err (!%p414_p10)
}
  0x1c   :  { %s418_s1 = scalar_lea.vmem %s23_s12, 128  ;;  %p423_p12 = scmp.lt.s32.totalorder %s23_s12, %s23_s12 }
  0x1d   :  { %p419_p11 = scmp.ne.s32.totalorder %s23_s12, %s418_s1  ;;  %p424_p13 = scmp.lt.s32.totalorder %s418_s1, %s418_s1 }
  0x1f   :  { %p425_p0 = por %p424_p13, %p423_p12 }
  0x21   :  { %p426_p1 = pnand %p425_p0, %p419_p11 }
  0x23   :  { %429 = shalt.err (!%p426_p1)
}
  0x24   :  { %25 = dma.hbm_to_vmem [thread:$0]  %s621_s0, 128, %s23_s12, [#allocation3]  }
  0x25   :  { %s430_s26 = scalar_lea.hbm %s624_s3, 2048 }
  0x26   :  { %p431_p2 = scmp.ne.s32.totalorder %s624_s3, %s430_s26  ;;  %p434_p3 = scmp.lt.u32.totalorder %s430_s26, %s624_s3 }
  0x28   :  { %p436_p4 = pnand %p434_p3, %p431_p2 }
  0x2a   :  { %439 = shalt.err (!%p436_p4)
}
  0x2b   :  { %s440_s9 = scalar_lea.vmem %s46_s14, 2048  ;;  %p445_p6 = scmp.lt.s32.totalorder %s46_s14, %s46_s14 }
  0x2c   :  { %p441_p5 = scmp.ne.s32.totalorder %s46_s14, %s440_s9  ;;  %p446_p7 = scmp.lt.s32.totalorder %s440_s9, %s440_s9 }
  0x2e   :  { %p447_p8 = por %p446_p7, %p445_p6 }
  0x30   :  { %p448_p9 = pnand %p447_p8, %p441_p5 }
  0x32   :  { %451 = shalt.err (!%p448_p9)
}
  0x33   :  { %51 = dma.hbm_to_vmem [thread:$0]  %s624_s3, 2048, %s46_s14, [#allocation6], %s505_s7, %s505_s7, %s506_s8  }
  0x34   :  { %496 = dma.done.wait [#allocation3], 128  }
  0x35   :  { %497 = vsyncadd [#allocation3], 4294967168 }
  0x36   :  { %498 = dma.done.wait [#allocation6], 2560  }
  0x37   :  { %499 = vsyncadd [#allocation6], 4294964736  ;;  %v509_v0 = vmov 0.0|0.0   ;;  %vm510_vm0 = vmmov 0   ;;  %v511_v1 = vmov 0.0   ;;  %v64_v2 = vld [vmem:[#allocation5] sm:$0xff] }
  0x38   :  { %346 = vmatprep.subr.bf16.mxu0 %v509_v0  ;;  %308 = vmatprep.mubr.msk.f32.mxu0 %vm510_vm0, %v511_v1  ;;  %v65_v3 = vld [vmem:[#allocation5 + $0x8] sm:$0xff]  ;;  %v66_v4 = vld [vmem:[#allocation5 + $0x10] sm:$0xff]  ;;  %v67_v6 = vld [vmem:[#allocation5 + $0x18] sm:$0xff]  ;;  %vm75_vm1 = vcmask 261120   ;;  %s512_s8 = smov [#allocation9]  }
  0x39   :  { %352 = vmatprep.subr.bf16.mxu1 %v509_v0  ;;  %343 = vmatprep.mubr.msk.f32.mxu1 %vm510_vm0, %v511_v1  ;;  %v347_v5 = vpack.c.bf16 %v65_v3, %v64_v2  ;;  %v151_v7 = vld [vmem:[#allocation7] sm:$0xff]  ;;  %v152_v8 = vld [vmem:[#allocation7 + $0x8] sm:$0xff]  ;;  %v153_v9 = vld [vmem:[#allocation7 + $0x10] sm:$0xff]  ;;  %v350_v11 = vpack.c.bf16 %v67_v6, %v66_v4  ;;  %s261_s11 = sshll.u32 %s512_s8, 4  ;;  %s262_s11 = int_to_ptr.vmem [resolvable:$true] %s261_s11 }
  0x3a   :  { %v154_v10 = vld [vmem:[#allocation7 + $0x18] sm:$0xff]  ;;  %v353_v12 = vpack.c.bf16 %v152_v8, %v151_v7  ;;  %v155_v14 = vld [vmem:[#allocation7 + $0x20] sm:$0xff]  ;;  %v156_v15 = vld [vmem:[#allocation7 + $0x28] sm:$0xff]  ;;  %s452_s12 = scalar_lea.vmem %s262_s11, 128  ;;  %p457_p11 = scmp.lt.s32.totalorder %s262_s11, %s262_s11 }
  0x3b   :  { %348 = vmatpush3.bf16.msra.mxu0 %v347_v5  ;;  %v356_v13 = vpack.c.bf16 %v154_v10, %v153_v9  ;;  %v63_v16 = vld [vmem:[#allocation2] sm:$0xff]  ;;  %v359_v17 = vpack.c.bf16 %v156_v15, %v155_v14  ;;  %v157_v18 = vld [vmem:[#allocation7 + $0x30] sm:$0xff]  ;;  %v159_v21 = vld [vmem:[#allocation7 + $0x40] sm:$0xff]  ;;  %p453_p10 = scmp.ne.s32.totalorder %s262_s11, %s452_s12  ;;  %p458_p12 = scmp.lt.s32.totalorder %s452_s12, %s452_s12 }
  0x3c   :  { %349 = vmatprep.subr.bf16.mxu0 %v509_v0  ;;  %354 = vmatpush3.bf16.msra.mxu1 %v353_v12  ;;  %v158_v19 = vld [vmem:[#allocation7 + $0x38] sm:$0xff]  ;;  %v160_v22 = vld [vmem:[#allocation7 + $0x48] sm:$0xff]  ;;  %v161_v24 = vld [vmem:[#allocation7 + $0x50] sm:$0xff] }
  0x3d   :  { %355 = vmatprep.subr.bf16.mxu1 %v509_v0  ;;  %v362_v20 = vpack.c.bf16 %v158_v19, %v157_v18  ;;  %v365_v23 = vpack.c.bf16 %v160_v22, %v159_v21  ;;  %v162_v25 = vld [vmem:[#allocation7 + $0x58] sm:$0xff]  ;;  %v163_v27 = vld [vmem:[#allocation7 + $0x60] sm:$0xff]  ;;  %v164_v28 = vld [vmem:[#allocation7 + $0x68] sm:$0xff]  ;;  %p459_p13 = por %p458_p12, %p457_p11 }
  0x3e   :  { %v368_v26 = vpack.c.bf16 %v162_v25, %v161_v24  ;;  %v371_v29 = vpack.c.bf16 %v164_v28, %v163_v27  ;;  %v165_v30 = vld [vmem:[#allocation7 + $0x70] sm:$0xff]  ;;  %v166_v31 = vld [vmem:[#allocation7 + $0x78] sm:$0xff] }
  0x3f   :  { %351 = vmatpush3.bf16.msra.mxu0 %v350_v11  ;;  %v374_v32 = vpack.c.bf16 %v166_v31, %v165_v30  ;;  %v275_v33 = vld [vmem:[%s623_s2] ss:$0 sm:$0xff]  ;;  %p460_p0 = pnand %p459_p13, %p453_p10 }
  0x40   :  { %357 = vmatpush3.bf16.msra.mxu1 %v356_v13 }
  0x41   :  { %358 = vmatprep.subr.bf16.mxu1 %v509_v0 }
  0x42   :  { %309 = vmatmul.mubr.msk.f32.vlgmr.msra.gmra.mrb[0].mxu0 %vm75_vm1, %v63_v16 }
  0x44   :  { %360 = vmatpush3.bf16.msra.mxu1 %v359_v17 }
  0x45   :  { %361 = vmatprep.subr.bf16.mxu1 %v509_v0 }
  0x48   :  { %363 = vmatpush3.bf16.msra.mxu1 %v362_v20 }
  0x49   :  { %364 = vmatprep.subr.bf16.mxu1 %v509_v0 }
  0x4c   :  { %366 = vmatpush3.bf16.msra.mxu1 %v365_v23 }
  0x4d   :  { %367 = vmatprep.subr.bf16.mxu1 %v509_v0 }
  0x50   :  { %369 = vmatpush3.bf16.msra.mxu1 %v368_v26 }
  0x51   :  { %370 = vmatprep.subr.bf16.mxu1 %v509_v0 }
  0x54   :  { %372 = vmatpush3.bf16.msra.mxu1 %v371_v29 }
  0x55   :  { %373 = vmatprep.subr.bf16.mxu1 %v509_v0 }
  0x58   :  { %375 = vmatpush3.bf16.msra.mxu1 %v374_v32 }
 0x115   :  { %v145_v34 = vpop.f32.mrb[0].mxu0 }
 0x116   :  { %v146_v35 = vadd.f32 %v275_v33, %v145_v34  ;;  %v310_v36 = vpop.f32.mrb[1].mxu0 }
 0x118   :  { %v149_v37 = vmax.f32 %v146_v35, 0.0 }
 0x11a   :  { %150 = vst [vmem:[#allocation9] sm:$0xff] %v149_v37  ;;  %344 = vmatmul.mubr.f32.vlgmr.msra.gmra.mrb[0].mxu1 %v149_v37 }
 0x11b   :  { %463 = shalt.err (!%p460_p0)
}
 0x11c   :  { %s464_s2 = scalar_lea.hbm %s627_s6, 128 }
 0x11d   :  { %p465_p1 = scmp.ne.s32.totalorder %s627_s6, %s464_s2  ;;  %p468_p2 = scmp.lt.u32.totalorder %s464_s2, %s627_s6 }
 0x11f   :  { %p470_p3 = pnand %p468_p2, %p465_p1 }
 0x121   :  { %473 = shalt.err (!%p470_p3)
}
 0x122   :  { %264 = dma.vmem_to_hbm [thread:$0]  %s262_s11, 128, %s627_s6, [#allocation10]   ;;  %v277_v38 = vld [vmem:[%s625_s4] ss:$0 sm:$0xff] }
 0x123   :  { %s513_s22 = smov [#allocation8]  }
 0x124   :  { %s251_s23 = sshll.u32 %s513_s22, 4  ;;  %s252_s23 = int_to_ptr.vmem [resolvable:$true] %s251_s23 }
 0x125   :  { %s474_s24 = scalar_lea.vmem %s252_s23, 128  ;;  %p479_p5 = scmp.lt.s32.totalorder %s252_s23, %s252_s23 }
 0x126   :  { %p475_p4 = scmp.ne.s32.totalorder %s252_s23, %s474_s24  ;;  %p480_p6 = scmp.lt.s32.totalorder %s474_s24, %s474_s24 }
 0x128   :  { %p481_p7 = por %p480_p6, %p479_p5 }
 0x12a   :  { %p482_p8 = pnand %p481_p7, %p475_p4 }
 0x1ed   :  { %v240_v39 = vpop.f32.mrb[0].mxu1 }
 0x1ee   :  { %v241_v40 = vadd.f32 %v277_v38, %v240_v39  ;;  %v345_v41 = vpop.f32.mrb[1].mxu1 }
 0x1f0   :  { %244 = vst [vmem:[#allocation8] sm:$0xff] %v241_v40 }
 0x1f1   :  { %485 = shalt.err (!%p482_p8)
}
 0x1f2   :  { %s486_s26 = scalar_lea.hbm %s626_s5, 128 }
 0x1f3   :  { %p487_p9 = scmp.ne.s32.totalorder %s626_s5, %s486_s26  ;;  %p490_p10 = scmp.lt.u32.totalorder %s486_s26, %s626_s5 }
 0x1f5   :  { %p492_p11 = pnand %p490_p10, %p487_p9 }
 0x1f7   :  { %495 = shalt.err (!%p492_p11)
}
 0x1f8   :  { %254 = dma.vmem_to_hbm [thread:$0]  %s252_s23, 128, %s626_s5, [#allocation4]  }
 0x1f9   :  { %500 = dma.done.wait [#allocation4], 128  }
 0x1fa   :  { %501 = vsyncadd [#allocation4], 4294967168 }
 0x1fb   :  { %502 = dma.done.wait [#allocation10], 128  }
 0x1fc   :  { %503 = vsyncadd [#allocation10], 4294967168 }
 0x1fd   :  { %271 = vsyncpa [#allocation3], 1 }
 0x1fe   :  { %272 = vsyncpa [#allocation6], 1 }
 0x1ff   :  { %273 = vsyncpa [#allocation4], 1 }
 0x200   :  { %274 = vsyncpa [#allocation10], 1 }

</bundles_post_ra>
